<compile_context>
chip_gen: v6e
topology: v6e:2x2x1
jax: 0.10.0
libtpu: 0.0.40
codegen_flags: <defaults>
</compile_context>

<pallas_src>
import functools

import jax
import jax.numpy as jnp
from jax.experimental import pallas as pl
from jax.experimental.pallas import tpu as pltpu

DROPOUT_P = 0.2


def _round_up(a, b):
    return ((a + b - 1) // b) * b


def _pick_divisor(dim, candidates):
    for c in candidates:
        if c <= dim and dim % c == 0:
            return c
    return dim


def _ffn_kernel(x_ref, w1_ref, b1_ref, w2_ref, b2_ref, *rest,
                training, keep_thr, inv_keep):
    """grid = (i: M tiles [parallel], h: hidden-dim chunks [arbitrary])."""
    if training:
        bits_ref, o_ref, acc_ref = rest
    else:
        o_ref, acc_ref = rest

    h_id = pl.program_id(1)
    n_h = pl.num_programs(1)

    @pl.when(h_id == 0)
    def _():
        acc_ref[...] = jnp.zeros_like(acc_ref)

    # Linear1 chunk + ReLU (bf16 MXU operands, f32 accumulation).
    hid = jnp.dot(x_ref[...], w1_ref[...], preferred_element_type=jnp.float32)
    hid = jnp.maximum(hid + b1_ref[...], 0.0)

    # Linear2 partial product, reduced across H chunks in the f32 accumulator.
    acc_ref[...] += jnp.dot(hid.astype(w2_ref.dtype), w2_ref[...],
                            preferred_element_type=jnp.float32)

    @pl.when(h_id == n_h - 1)
    def _():
        y = acc_ref[...] + b2_ref[...]
        if training:
            # Inverted dropout: integer-threshold compare on raw random bits,
            # applied exactly once per output element at finalize.
            keep = bits_ref[...] >= jnp.int32(keep_thr)
            y = jnp.where(keep, y * inv_keep, 0.0)
        o_ref[...] = y.astype(o_ref.dtype)


def feed_forward(x, w1, b1, w2, b2, *, key=None, training=False,
                 tm=256, th=512):
    """x: (B, T, E). w1: (E, H), b1: (H,), w2: (H, E), b2: (E,) -> (B, T, E)."""
    B, T, E = x.shape
    H = w1.shape[1]
    M = B * T

    # Row tile: as large as possible (multiple of 16 for bf16 sublanes); pad M.
    tm = min(tm, _round_up(M, 16))
    M_pad = _round_up(M, tm)
    # Hidden-dim chunk: largest of (th, 256, 128) dividing H, else whole H.
    th = _pick_divisor(H, (th, 256, 128))

    out_dtype = x.dtype

    # bf16 operands for the MXU; biases stay f32.
    xb = x.reshape(M, E).astype(jnp.bfloat16)
    if M_pad != M:
        xb = jnp.pad(xb, ((0, M_pad - M), (0, 0)))
    w1b = w1.astype(jnp.bfloat16)
    w2b = w2.astype(jnp.bfloat16)
    b1_2 = b1.reshape(1, H).astype(jnp.float32)
    b2_2 = b2.reshape(1, E).astype(jnp.float32)

    n_m = M_pad // tm
    n_h = H // th

    inputs = [xb, w1b, b1_2, w2b, b2_2]
    in_specs = [
        pl.BlockSpec((tm, E), lambda i, h: (i, 0)),   # x rows (per M tile)
        pl.BlockSpec((E, th), lambda i, h: (0, h)),   # W1 column chunk
        pl.BlockSpec((1, th), lambda i, h: (0, h)),   # b1 chunk
        pl.BlockSpec((th, E), lambda i, h: (h, 0)),   # W2 row chunk
        pl.BlockSpec((1, E), lambda i, h: (0, 0)),    # b2 (resident)
    ]

    keep_thr = 0
    if training:
        if key is None:
            key = jax.random.PRNGKey(0)
        # Portable RNG: bits are drawn outside the kernel (works on TPU and in
        # interpret mode) and thresholded inside the kernel.
        bits = jax.random.bits(key, (M_pad, E), jnp.uint32)
        bits = jax.lax.bitcast_convert_type(bits, jnp.int32)
        inputs.append(bits)
        in_specs.append(pl.BlockSpec((tm, E), lambda i, h: (i, 0)))
        # keep iff bits >= thr with P(keep) = 1 - p  (signed-int32 threshold).
        keep_thr = int(round(DROPOUT_P * (1 << 32))) - (1 << 31)

    kernel = functools.partial(
        _ffn_kernel, training=training, keep_thr=keep_thr,
        inv_keep=float(1.0 / (1.0 - DROPOUT_P)))

    flops = 4 * M_pad * E * H
    bytes_accessed = (xb.size * 2 + w1b.size * 2 + w2b.size * 2
                      + b1_2.size * 4 + b2_2.size * 4 + M_pad * E * 4
                      + (M_pad * E * 4 if training else 0))

    out = pl.pallas_call(
        kernel,
        out_shape=jax.ShapeDtypeStruct((M_pad, E), out_dtype),
        grid_spec=pltpu.PrefetchScalarGridSpec(
            num_scalar_prefetch=0,
            grid=(n_m, n_h),
            in_specs=in_specs,
            out_specs=pl.BlockSpec((tm, E), lambda i, h: (i, 0)),
            scratch_shapes=[pltpu.VMEM((tm, E), jnp.float32)],
        ),
        compiler_params=pltpu.CompilerParams(
            dimension_semantics=("parallel", "arbitrary"),
            vmem_limit_bytes=48 * 1024 * 1024,
        ),
        cost_estimate=pl.CostEstimate(
            flops=flops, transcendentals=0, bytes_accessed=bytes_accessed),
    )(*inputs)

    if M_pad != M:
        out = out[:M]
    return out.reshape(B, T, E)


def _init_params(key, n_embd):
    """PyTorch nn.Linear default init: U[-1/sqrt(fan_in), 1/sqrt(fan_in)]."""
    h = 4 * n_embd
    k1, k2, k3, k4 = jax.random.split(key, 4)
    lim1 = 1.0 / (n_embd ** 0.5)
    lim2 = 1.0 / (h ** 0.5)
    w1 = jax.random.uniform(k1, (n_embd, h), jnp.float32, -lim1, lim1)
    b1 = jax.random.uniform(k2, (h,), jnp.float32, -lim1, lim1)
    w2 = jax.random.uniform(k3, (h, n_embd), jnp.float32, -lim2, lim2)
    b2 = jax.random.uniform(k4, (n_embd,), jnp.float32, -lim2, lim2)
    return w1, b1, w2, b2


if __name__ == "__main__":
    # Module spec: n_embd = 384, hidden = 4 * 384 = 1536.  batch=2, seq=8.
    B, T, E = 2, 8, 384
    key = jax.random.PRNGKey(0)
    kx, kp, kd = jax.random.split(key, 3)
    x = jax.random.normal(kx, (B, T, E), jnp.float32)
    w1, b1, w2, b2 = _init_params(kp, E)

    # Eval mode (dropout = identity): compare against a plain-JAX reference
    # using the same bf16 operand rounding / f32 accumulation as the kernel.
    y_eval = jax.block_until_ready(feed_forward(x, w1, b1, w2, b2, training=False))
    xb = x.reshape(-1, E).astype(jnp.bfloat16).astype(jnp.float32)
    w1b = w1.astype(jnp.bfloat16).astype(jnp.float32)
    w2b = w2.astype(jnp.bfloat16).astype(jnp.float32)
    h_ref = jnp.maximum(xb @ w1b + b1, 0.0)
    ref = (h_ref.astype(jnp.bfloat16).astype(jnp.float32) @ w2b + b2)
    ref = ref.reshape(B, T, E)
    assert y_eval.shape == (B, T, E)
    assert jnp.allclose(y_eval, ref, atol=1e-2, rtol=1e-2), "mismatch vs reference"

    # Training mode exercises the in-kernel inverted-dropout path.
    # TODO(synk): PyTorch's exact dropout RNG stream is not reproducible here.
    y_train = jax.block_until_ready(
        feed_forward(x, w1, b1, w2, b2, key=kd, training=True))
    assert y_train.shape == (B, T, E)
    assert bool(jnp.all(jnp.isfinite(y_train)))
    # Surviving elements equal the eval output scaled by 1/(1-p); dropped -> 0.
    scaled = y_eval * (1.0 / (1.0 - DROPOUT_P))
    ok = (y_train == 0) | jnp.isclose(y_train, scaled, atol=1e-3, rtol=1e-3)
    assert bool(jnp.all(ok))
    keep_frac = float(jnp.mean((y_train != 0).astype(jnp.float32)))
    assert 0.65 < keep_frac < 0.95, f"unexpected dropout keep fraction {keep_frac}"

    print("KERNEL_OK")
</pallas_src>

<mosaic_0001>
module attributes {stable_mosaic.version = 11 : i64} {
  func.func @_ffn_kernel(%arg0: i32, %arg1: i32, %arg2: memref<16x384xbf16, #tpu.memory_space<vmem>>, %arg3: memref<384x512xbf16, #tpu.memory_space<vmem>>, %arg4: memref<1x512xf32, #tpu.memory_space<vmem>>, %arg5: memref<512x384xbf16, #tpu.memory_space<vmem>>, %arg6: memref<1x384xf32, #tpu.memory_space<vmem>>, %arg7: memref<16x384xf32, #tpu.memory_space<vmem>>, %arg8: memref<16x384xf32, #tpu.memory_space<vmem>>) attributes {dimension_semantics = [#tpu.dimension_semantics<parallel>, #tpu.dimension_semantics<arbitrary>], iteration_bounds = array<i64: 1, 3>, scalar_prefetch = 0 : i64, scratch_operands = 1 : i64, tpu.core_type = #tpu.core_type<tc>, window_params = [{transform_indices = @transform_0, window_bounds = array<i64: 16, 384>}, {transform_indices = @transform_1, window_bounds = array<i64: 384, 512>}, {transform_indices = @transform_2, window_bounds = array<i64: 1, 512>}, {transform_indices = @transform_3, window_bounds = array<i64: 512, 384>}, {pipeline_mode = #tpu.pipeline_mode<synchronous>, transform_indices = @transform_4, window_bounds = array<i64: 1, 384>}, {transform_indices = @transform_5, window_bounds = array<i64: 16, 384>}]} {
    %c0_i32 = arith.constant 0 : i32
    %0 = arith.cmpi eq, %arg1, %c0_i32 : i32
    %1 = arith.extui %0 : i1 to i32
    %c0_i32_0 = arith.constant 0 : i32
    %2 = arith.cmpi ne, %1, %c0_i32_0 : i32
    scf.if %2 {
      %cst_15 = arith.constant 0.000000e+00 : f32
      %20 = vector.broadcast %cst_15 : f32 to vector<16x384xf32>
      %c0_16 = arith.constant 0 : index
      %c0_17 = arith.constant 0 : index
      %21 = vector.load %arg8[%c0_16, %c0_17] : memref<16x384xf32, #tpu.memory_space<vmem>>, vector<16x384xf32>
      tpu.vector_store %arg8[%c0_16, %c0_17], %20 {strides = array<i32>} : memref<16x384xf32, #tpu.memory_space<vmem>>, vector<16x384xf32>,
    } else {
    }
    %c0 = arith.constant 0 : index
    %c0_1 = arith.constant 0 : index
    %3 = vector.load %arg2[%c0, %c0_1] : memref<16x384xbf16, #tpu.memory_space<vmem>>, vector<16x384xbf16>
    %c0_2 = arith.constant 0 : index
    %c0_3 = arith.constant 0 : index
    %4 = vector.load %arg3[%c0_2, %c0_3] : memref<384x512xbf16, #tpu.memory_space<vmem>>, vector<384x512xbf16>
    %cst = arith.constant dense<0.000000e+00> : vector<16x512xf32>
    %5 = tpu.matmul %3, %4, %cst {dimension_numbers = #tpu.dot_dimension_numbers<[1], [0], [0], [1], [0, 0, 1, 1], [], []>} : vector<16x384xbf16>, vector<384x512xbf16>, vector<16x512xf32> -> vector<16x512xf32>
    %c0_4 = arith.constant 0 : index
    %c0_5 = arith.constant 0 : index
    %6 = vector.load %arg4[%c0_4, %c0_5] : memref<1x512xf32, #tpu.memory_space<vmem>>, vector<1x512xf32>
    %7 = vector.broadcast %6 : vector<1x512xf32> to vector<16x512xf32>
    %8 = arith.addf %5, %7 : vector<16x512xf32>
    %cst_6 = arith.constant 0.000000e+00 : f32
    %9 = vector.broadcast %cst_6 : f32 to vector<16x512xf32>
    %10 = arith.maximumf %8, %9 : vector<16x512xf32>
    %c0_7 = arith.constant 0 : index
    %c0_8 = arith.constant 0 : index
    %11 = vector.load %arg8[%c0_7, %c0_8] : memref<16x384xf32, #tpu.memory_space<vmem>>, vector<16x384xf32>
    %12 = arith.truncf %10 : vector<16x512xf32> to vector<16x512xbf16>
    %c0_9 = arith.constant 0 : index
    %c0_10 = arith.constant 0 : index
    %13 = vector.load %arg5[%c0_9, %c0_10] : memref<512x384xbf16, #tpu.memory_space<vmem>>, vector<512x384xbf16>
    %cst_11 = arith.constant dense<0.000000e+00> : vector<16x384xf32>
    %14 = tpu.matmul %12, %13, %cst_11 {dimension_numbers = #tpu.dot_dimension_numbers<[1], [0], [0], [1], [0, 0, 1, 1], [], []>} : vector<16x512xbf16>, vector<512x384xbf16>, vector<16x384xf32> -> vector<16x384xf32>
    %15 = arith.addf %11, %14 : vector<16x384xf32>
    %c0_12 = arith.constant 0 : index
    %c0_13 = arith.constant 0 : index
    %16 = vector.load %arg8[%c0_12, %c0_13] : memref<16x384xf32, #tpu.memory_space<vmem>>, vector<16x384xf32>
    tpu.vector_store %arg8[%c0_12, %c0_13], %15 {strides = array<i32>} : memref<16x384xf32, #tpu.memory_space<vmem>>, vector<16x384xf32>,
    %c2_i32 = arith.constant 2 : i32
    %17 = arith.cmpi eq, %arg1, %c2_i32 : i32
    %18 = arith.extui %17 : i1 to i32
    %c0_i32_14 = arith.constant 0 : i32
    %19 = arith.cmpi ne, %18, %c0_i32_14 : i32
    scf.if %19 {
      %c0_15 = arith.constant 0 : index
      %c0_16 = arith.constant 0 : index
      %20 = vector.load %arg8[%c0_15, %c0_16] : memref<16x384xf32, #tpu.memory_space<vmem>>, vector<16x384xf32>
      %c0_17 = arith.constant 0 : index
      %c0_18 = arith.constant 0 : index
      %21 = vector.load %arg6[%c0_17, %c0_18] : memref<1x384xf32, #tpu.memory_space<vmem>>, vector<1x384xf32>
      %22 = vector.broadcast %21 : vector<1x384xf32> to vector<16x384xf32>
      %23 = arith.addf %20, %22 : vector<16x384xf32>
      %c0_19 = arith.constant 0 : index
      %c0_20 = arith.constant 0 : index
      %24 = vector.load %arg7[%c0_19, %c0_20] : memref<16x384xf32, #tpu.memory_space<vmem>>, vector<16x384xf32>
      tpu.vector_store %arg7[%c0_19, %c0_20], %23 {strides = array<i32>} : memref<16x384xf32, #tpu.memory_space<vmem>>, vector<16x384xf32>,
    } else {
    }
    return
  }
  func.func @transform_0(%arg0: i32, %arg1: i32) -> (i32, i32) {
    %c0_i32 = arith.constant 0 : i32
    %c0_i32_0 = arith.constant 0 : i32
    return %arg0, %c0_i32 : i32, i32
  }
  func.func @transform_1(%arg0: i32, %arg1: i32) -> (i32, i32) {
    %c0_i32 = arith.constant 0 : i32
    %c0_i32_0 = arith.constant 0 : i32
    return %c0_i32, %arg1 : i32, i32
  }
  func.func @transform_2(%arg0: i32, %arg1: i32) -> (i32, i32) {
    %c0_i32 = arith.constant 0 : i32
    %c0_i32_0 = arith.constant 0 : i32
    return %c0_i32, %arg1 : i32, i32
  }
  func.func @transform_3(%arg0: i32, %arg1: i32) -> (i32, i32) {
    %c0_i32 = arith.constant 0 : i32
    %c0_i32_0 = arith.constant 0 : i32
    return %arg1, %c0_i32 : i32, i32
  }
  func.func @transform_4(%arg0: i32, %arg1: i32) -> (i32, i32) {
    %c0_i32 = arith.constant 0 : i32
    %c0_i32_0 = arith.constant 0 : i32
    %c0_i32_1 = arith.constant 0 : i32
    return %c0_i32, %c0_i32_0 : i32, i32
  }
  func.func @transform_5(%arg0: i32, %arg1: i32) -> (i32, i32) {
    %c0_i32 = arith.constant 0 : i32
    %c0_i32_0 = arith.constant 0 : i32
    return %arg0, %c0_i32 : i32, i32
  }
}

</mosaic_0001>

<bundles_post_ra>
// kernel: tpu_custom_call.1
= control target key start
LH: loop header
LB: loop body
LE: loop exit
PB: predicated region body
PF: predicated region fallthrough
CT: control target
= control target key end

     0   :  { %s3529_s0 = inlined_call_operand.hbm [shape: bf16[16,384], index: 0, kind: input, shape index: {}]   ;;  %s3530_s1 = inlined_call_operand.hbm [shape: bf16[384,1536], index: 1, kind: input, shape index: {}]   ;;  %s3531_s2 = inlined_call_operand.hbm [shape: f32[1,1536], index: 2, kind: input, shape index: {}]   ;;  %s3532_s3 = inlined_call_operand.hbm [shape: bf16[1536,384], index: 3, kind: input, shape index: {}]   ;;  %s3533_s4 = inlined_call_operand.hbm [shape: f32[1,384], index: 4, kind: input, shape index: {}]   ;;  %s3534_s5 = inlined_call_operand.hbm [shape: f32[16,384], index: 5, kind: output, shape index: {}]  }
   0x1   :  { %3539 = sst [smem:[#allocation20_spill]] %s3530_s1 }
   0x2   :  { %3540 = sst [smem:[#allocation21_spill]] %s3533_s4 }
   0x3   :  { %10 = vsyncpa [#allocation4], 0 }
   0x4   :  { %11 = vsyncpa [#allocation7], 0 }
   0x5   :  { %13 = vsyncpa [#allocation7 + $0x1], 0 }
   0x6   :  { %14 = vsyncpa [#allocation10], 0 }
   0x7   :  { %16 = vsyncpa [#allocation10 + $0x1], 0 }
   0x8   :  { %17 = vsyncpa [#allocation5], 0  ;;  %s3102_s18 = smov 0   ;;  %s3104_s19 = smov 0  }
   0x9   :  { %s3106_s20 = smov 0   ;;  %s3108_s21 = smov 0  }
   0xa   :  { %s3110_s22 = smov 0   ;;  %s3112_s23 = smov 0  }
   0xb LB: > { %s3131_s24 = sadd.s32 4294967295, %s3055_s23   ;;  %s68_s25 = sadd.s32 1, %s3043_s20  ;;  %s3055_s23 = sphi %s3112_s23, %s23_s23   ;;  %s3051_s22 = sphi %s3110_s22, %s3561_s22   ;;  %s3047_s21 = sphi %s3108_s21, %s3560_s21   ;;  %s3043_s20 = sphi %s3106_s20, %s3559_s20   ;;  %s3039_s19 = sphi %s3104_s19, %s3558_s19   ;;  %s3035_s18 = sphi %s3102_s18, %s3557_s18  }
   0xc   : > { %p75_p0 = scmp.ne.s32.totalorder %s3043_s20, %s3039_s19  ;;  %p76_p1 = scmp.eq.s32.totalorder %s3055_s23, 0 }
   0xd   : > { %p81_p2 = scmp.ne.s32.totalorder %s3039_s19, %s3035_s18  ;;  %p3535_p3 = scmp.eq.s32.totalorder %s3131_s24, 0 }
   0xe   : > { %p77_p4 = por %p76_p1, %p75_p0  ;;  %p2184_p5 = scmp.ge.s32.totalorder %s3055_s23, 1 }
   0xf   : > { %p3142_p6 = por %p3535_p3, %p81_p2  ;;  %p191_p7 = scmp.lt.s32.totalorder %s3055_s23, 4 }
  0x10   : > { %s3057_s28 = smov [#allocation11]   ;;  %p2488_p10 = scmp.lt.s32.totalorder %s3055_s23, 3 }
  0x11   : > { %p3147_p8 = pnand %p2184_p5, %p191_p7  ;;  %s221_s29 = sshll.u32 %s3057_s28, 4  ;;  %s222_s29 = int_to_ptr.vmem [resolvable:$true] %s221_s29 }
  0x12   : > { %s3536_s30 = sand.u32 1, %s3055_s23   ;;  %p3161_p12 = pnand %p2488_p10, %p77_p4 }
  0x13   : > { %p2469_p9 = pneg %p3147_p8  ;;  %s2840_s8 = scalar_lea.vmem %s222_s29, 48 }
  0x14   : > { %p2841_p0 = scmp.ne.s32.totalorder %s222_s29, %s2840_s8  ;;  %s2847_s9 = scalar_lea.vmem %s222_s29, 64 }
  0x15   : > { %p3157_p11 = pnand %p2469_p9, %p3535_p3  ;;  %p2848_p5 = scmp.lt.s32.totalorder %s222_s29, %s222_s29 }
  0x16   : > { %p2849_p7 = scmp.lt.s32.totalorder %s2847_s9, %s2840_s8 }
  0x17   : > { %p2831_p13 = pneg %p3157_p11 }
  0x18   : > { %p2850_p9 = por %p2849_p7, %p2848_p5 }
  0x19   : > { %p2843_p1 = pnand %p2841_p0, %p2831_p13 }
  0x1b   : > { %p2844_p2 = pneg %p2843_p1 }
  0x1d   : > { %p2851_p3 = pnand %p2850_p9, %p2844_p2 }
  0x1f   : > { %2854 = shalt.err (!%p2851_p3)
}
  0x20   : > { %s3545_s4 = sld [smem:[#allocation21_spill]]  ;;  %s32_s12 = sadd.s32 1, %s3051_s22 }
  0x21   : > { %s3537_s13 = sand.u32 1, %s3043_s20   ;;  %p33_p4 = scmp.ge.s32.totalorder %s32_s12, 3 }
  0x22   : > { %s3179_s14 = smul.u32 768, %s3537_s13  ;;  %s2401_s15 = sshll.u32 %s3051_s22, 8 }
  0x23   : > { %s3563_s12 = smov (%p33_p4, %s32_s12), 0  ;;  %s3547_s1 = sld [smem:[#allocation20_spill]] }
  0x24   : > { %3546 = sst [smem:[#allocation18_spill]] %s3563_s12  ;;  %s65_s28 = ssub.s32 %s3051_s22, %s3563_s12 }
  0x25   : > { %s236_s8 = scalar_lea.vmem [#allocation6], %s3179_s14  ;;  %p66_p3 = scmp.eq.s32.totalorder %s65_s28, 0 }
  0x26   : > { %2475 = dma.hbm_to_vmem [thread:$0]  (!%p3157_p11), %s3545_s4, 48, %s222_s29, [#allocation10]  }
  0x27   : > { %s243_s29 = sshll.u32 %s236_s8, 4  ;;  %s3199_s10 = scalar_lea.sflag [#allocation7], %s3536_s30  ;;  %s244_s29 = int_to_ptr.vmem [resolvable:$true] %s243_s29 }
  0x28   : > { %s3195_s9 = scalar_select %p66_p3, %s3043_s20, %s68_s25  }
  0x29   : > { %s3187_s18 = scalar_lea.hbm %s3547_s1, %s2401_s15  ;;  %p2857_p10 = pneg %p3161_p12 }
  0x2a   : > { %3548 = sst [smem:[#allocation19_spill]] %s3195_s9  ;;  %s2868_s11 = scalar_lea.vmem %s244_s29, 12288 }
  0x2b   : > { %p2869_p0 = scmp.ne.s32.totalorder %s244_s29, %s2868_s11  ;;  %s3058_s15 = smov [#allocation6]  }
  0x2c   : > { %s2873_s16 = sshll.u32 %s3058_s15, 4  ;;  %s2874_s16 = int_to_ptr.vmem [resolvable:$false] %s2873_s16 }
  0x2d   : > { %p2871_p1 = pnand %p2869_p0, %p2857_p10  ;;  %s2875_s17 = scalar_lea.vmem %s2874_s16, 24576 }
  0x2e   : > { %p2876_p5 = scmp.lt.s32.totalorder %s244_s29, %s2874_s16  ;;  %p2877_p7 = scmp.lt.s32.totalorder %s2875_s17, %s2868_s11 }
  0x2f   : > { %p2872_p2 = pneg %p2871_p1 }
  0x30   : > { %p2878_p9 = por %p2877_p7, %p2876_p5 }
  0x32   : > { %p2879_p4 = pnand %p2878_p9, %p2872_p2 }
  0x34   : > { %2882 = shalt.err (!%p2879_p4)
}
  0x35   : > { %s3059_s25 = smov 768   ;;  %s3060_s28 = smov 256  }
  0x36   : > { %s3061_s8 = smov 16   ;;  %s3062_s30 = smov [#allocation3]  }
  0x37   : > { %2479 = dma.hbm_to_vmem [thread:$0]  (!%p3161_p12), %s3187_s18, 12288, %s244_s29, %s3199_s10, %s3059_s25, %s3060_s28, %s3061_s8  }
  0x38   : > { %s207_s13 = sshll.u32 %s3062_s30, 4  ;;  %s3549_s15 = sand.u32 1, %s3043_s20   ;;  %s208_s13 = int_to_ptr.vmem [resolvable:$true] %s207_s13 }
  0x39   : > { %s2190_s1 = sshll.u32 %s3549_s15, 2  ;;  %s2894_s16 = scalar_lea.vmem %s208_s13, 384 }
  0x3a   : > { %p2895_p3 = scmp.ne.s32.totalorder %s208_s13, %s2894_s16  ;;  %p2902_p2 = scmp.lt.s32.totalorder %s208_s13, %s208_s13 }
  0x3b   : > { %p2903_p5 = scmp.lt.s32.totalorder %s2894_s16, %s2894_s16 }
  0x3c   : > { %p2897_p0 = pnand %p2895_p3, %p2831_p13 }
  0x3d   : > { %p2904_p7 = por %p2903_p5, %p2902_p2 }
  0x3e   : > { %p2898_p1 = pneg %p2897_p0 }
  0x40   : > { %p2905_p9 = pnand %p2904_p7, %p2898_p1 }
  0x42   : > { %2908 = shalt.err (!%p2905_p9)
}
  0x43   : > { %s3063_s11 = smov 192   ;;  %s3064_s18 = smov 12  }
  0x44   : > { %2472 = dma.hbm_to_vmem [thread:$0]  (!%p3157_p11), %s3529_s0, 384, %s208_s13, [#allocation4], %s3063_s11, %s3063_s11, %s3064_s18  }
  0x45   : > { %s2402_s17 = sshll.u32 %s3051_s22, 6  ;;  %s257_s15 = scalar_lea.vmem [#allocation8], %s2190_s1 }
  0x46   : > { %s263_s8 = scalar_lea.hbm %s3531_s2, %s2402_s17  ;;  %s265_s16 = sshll.u32 %s257_s15, 4  ;;  %s266_s16 = int_to_ptr.vmem [resolvable:$true] %s265_s16 }
  0x47   : > { %s2922_s4 = scalar_lea.vmem %s266_s16, 64  ;;  %s3065_s6 = smov [#allocation8]  }
  0x48   : > { %p2923_p13 = scmp.ne.s32.totalorder %s266_s16, %s2922_s4  ;;  %s2927_s12 = sshll.u32 %s3065_s6, 4  ;;  %s2928_s12 = int_to_ptr.vmem [resolvable:$false] %s2927_s12 }
  0x49   : > { %s2929_s9 = scalar_lea.vmem %s2928_s12, 128  ;;  %p2930_p0 = scmp.lt.s32.totalorder %s266_s16, %s2928_s12 }
  0x4a   : > { %p2925_p4 = pnand %p2923_p13, %p2857_p10  ;;  %p2931_p11 = scmp.lt.s32.totalorder %s2929_s9, %s2922_s4 }
  0x4c   : > { %p2926_p3 = pneg %p2925_p4  ;;  %p2932_p1 = por %p2931_p11, %p2930_p0 }
  0x4e   : > { %p2933_p2 = pnand %p2932_p1, %p2926_p3 }
  0x50   : > { %2936 = shalt.err (!%p2933_p2)
}
  0x51   : > { %2482 = dma.hbm_to_vmem [thread:$0]  (!%p3161_p12), %s263_s8, 64, %s266_s16, %s3199_s10  }
  0x52   : > { %s2449_s1 = smul.u32 12288, %s3051_s22  ;;  %s276_s13 = scalar_lea.vmem [#allocation9], %s3179_s14 }
  0x53   : > { %s284_s30 = sshll.u32 %s276_s13, 4  ;;  %s3550_s4 = sand.u32 1, %s3055_s23   ;;  %s285_s30 = int_to_ptr.vmem [resolvable:$true] %s284_s30 }
  0x54   : > { %s283_s25 = scalar_lea.hbm %s3532_s3, %s2449_s1  ;;  %s273_s12 = scalar_lea.sflag [#allocation10], %s3550_s4 }
  0x55   : > { %s2950_s9 = scalar_lea.vmem %s285_s30, 12288  ;;  %s3066_s28 = smov [#allocation9]  }
  0x56   : > { %p2951_p5 = scmp.ne.s32.totalorder %s285_s30, %s2950_s9  ;;  %s2955_s15 = sshll.u32 %s3066_s28, 4  ;;  %s2956_s15 = int_to_ptr.vmem [resolvable:$false] %s2955_s15 }
  0x57   : > { %s2957_s10 = scalar_lea.vmem %s2956_s15, 24576  ;;  %p2958_p13 = scmp.lt.s32.totalorder %s285_s30, %s2956_s15 }
  0x58   : > { %p2953_p7 = pnand %p2951_p5, %p2857_p10  ;;  %p2959_p4 = scmp.lt.s32.totalorder %s2957_s10, %s2950_s9 }
  0x5a   : > { %p2954_p9 = pneg %p2953_p7  ;;  %p2960_p3 = por %p2959_p4, %p2958_p13 }
  0x5c   : > { %p2961_p0 = pnand %p2960_p3, %p2954_p9 }
  0x5e   : > { %2964 = shalt.err (!%p2961_p0)
}
  0x5f   : > { %2485 = dma.hbm_to_vmem [thread:$0]  (!%p3161_p12), %s283_s25, 12288, %s285_s30, %s273_s12, %s3063_s11, %s3063_s11, %s3064_s18  }
  0x60   : > { %296 = sbr.rel (%p3147_p8) target bundleno = 694 (0x2b6), region = 40  ;;  %p3551_p10 = scmp.eq.s32.totalorder (!%p3147_p8), %s3131_s24, 0 }
  0x65   : > { %3014 = dma.done.wait (%p3551_p10), [#allocation4], 384   ;;  %p3552_p11 = pmov %p3551_p10 }
  0x66   : > { %s302_s14 = sand.u32 1, %s3131_s24   ;;  %s304_s8 = sand.u32 1, %s3039_s19  }
  0x67   : > { %3016 = vsyncadd (%p3552_p11), [#allocation4], 4294966912  ;;  %s2450_s16 = smul.u32 768, %s304_s8  ;;  %s303_s7 = scalar_lea.sflag [#allocation7], %s302_s14 }
  0x69   : > { %s3256_s6 = scalar_lea.vmem [#allocation6], %s2450_s16 }
  0x6a   : > { %3018 = dma.done.wait (%p3142_p6), %s303_s7, 12352  }
  0x6b   : > { %3020 = vsyncadd (%p3142_p6), %s303_s7, 4294954944  ;;  %s3262_s27 = sshll.u32 %s304_s8, 2  ;;  %s321_s18 = scalar_lea.sflag [#allocation10], %s302_s14 }
  0x6c   : > { %s315_s11 = scalar_lea.vmem [#allocation8], %s3262_s27  ;;  %s3265_s1 = scalar_lea.vmem [#allocation9], %s2450_s16 }
  0x6d   : > { %3022 = dma.done.wait (%p3142_p6), %s321_s18, 12288  }
  0x6e   : > { %3024 = vsyncadd (%p3142_p6), %s321_s18, 4294955008  ;;  %p3553_p8 = pmov %p3551_p10 }
  0x70   : > { %3026 = dma.done.wait (%p3553_p8), [#allocation10], 48   ;;  %p3554_p12 = pmov %p3553_p8 }
  0x71   : > { %p2200_p1 = scmp.ne.s32.totalorder %s3047_s21, 0 }
  0x72   : > { %3028 = vsyncadd (%p3554_p12), [#allocation10], 4294967248 }
  0x73   : > { %369 = sbr.rel (%p2200_p1) target bundleno = 124 (0x7c), region = 64 }
  0x78   : > { %v3067_v0 = vmov 0.0  }
  0x79   : > { %370 = vst [vmem:[#allocation2 + $0x28] sm:$0xff] %v3067_v0  ;;  %371 = vst [vmem:[#allocation2 + $0x10] sm:$0xff] %v3067_v0 }
  0x7a   : > { %372 = vst [vmem:[#allocation2 + $0x8] sm:$0xff] %v3067_v0  ;;  %373 = vst [vmem:[#allocation2] sm:$0xff] %v3067_v0 }
  0x7b   : > { %374 = vst [vmem:[#allocation2 + $0x18] sm:$0xff] %v3067_v0  ;;  %375 = vst [vmem:[#allocation2 + $0x20] sm:$0xff] %v3067_v0 }
  0x7c PF: > { %v2553_v1 = vld [vmem:[%s3256_s6 + $0xe4] ss:$16 sps:$4 sm:$0xff]   ;;  %v3068_v3 = vmov 0   ;;  %v2557_v4 = vld [vmem:[%s3256_s6 + $0xe0] ss:$16 sps:$4 sm:$0xff]   ;;  %p2396_p6 = scmp.ne.s32.totalorder %s3047_s21, 2 }
  0x7d   : > { %v2555_v2 = vld [vmem:[%s3256_s6 + $0x2e4] ss:$16 sps:$4 sm:$0xff]   ;;  %1069 = vmatprep.mubr.bf16.mxu1 %v3068_v3  ;;  %994 = vmatprep.subr.bf16.mxu0 %v2553_v1  ;;  %v2558_v5 = vld [vmem:[%s3256_s6 + $0x2e0] ss:$16 sps:$4 sm:$0xff]   ;;  %v2606_v35 = vld [vmem:[%s3256_s6 + $0xec] ss:$16 sps:$4 sm:$0xff]  }
  0x7e   : > { %1037 = vmatprep.subr.bf16.mxu1 %v2555_v2  ;;  %v2559_v6 = vld [vmem:[%s3256_s6 + $0xc4] ss:$16 sps:$4 sm:$0xff]   ;;  %995 = vmatpush1.bf16.msra.mxu0 %v2557_v4  ;;  %v2563_v8 = vld [vmem:[%s3256_s6 + $0xc0] ss:$16 sps:$4 sm:$0xff]   ;;  %v2604_v37 = vld [vmem:[%s3256_s6 + $0xe8] ss:$16 sps:$4 sm:$0xff]  }
  0x7f   : > { %1038 = vmatpush1.bf16.msra.mxu1 %v2558_v5  ;;  %v2561_v7 = vld [vmem:[%s3256_s6 + $0x2c4] ss:$16 sps:$4 sm:$0xff]   ;;  %996 = vmatprep.subr.bf16.mxu0 %v2559_v6  ;;  %v2564_v9 = vld [vmem:[%s3256_s6 + $0x2c0] ss:$16 sps:$4 sm:$0xff]   ;;  %v2612_v40 = vld [vmem:[%s3256_s6 + $0xcc] ss:$16 sps:$4 sm:$0xff]  }
  0x80   : > { %1039 = vmatprep.subr.bf16.mxu1 %v2561_v7  ;;  %v2565_v10 = vld [vmem:[%s3256_s6 + $0xa4] ss:$16 sps:$4 sm:$0xff]   ;;  %v2569_v12 = vld [vmem:[%s3256_s6 + $0xa0] ss:$16 sps:$4 sm:$0xff]   ;;  %v2610_v41 = vld [vmem:[%s3256_s6 + $0xc8] ss:$16 sps:$4 sm:$0xff]  }
  0x81   : > { %v2567_v11 = vld [vmem:[%s3256_s6 + $0x2a4] ss:$16 sps:$4 sm:$0xff]   ;;  %v2570_v13 = vld [vmem:[%s3256_s6 + $0x2a0] ss:$16 sps:$4 sm:$0xff]   ;;  %v2618_v44 = vld [vmem:[%s3256_s6 + $0xac] ss:$16 sps:$4 sm:$0xff]  }
  0x82   : > { %997 = vmatpush1.bf16.msra.mxu0 %v2563_v8  ;;  %v2571_v14 = vld [vmem:[%s3256_s6 + $0x84] ss:$16 sps:$4 sm:$0xff]   ;;  %v2575_v16 = vld [vmem:[%s3256_s6 + $0x80] ss:$16 sps:$4 sm:$0xff]   ;;  %v2616_v45 = vld [vmem:[%s3256_s6 + $0xa8] ss:$16 sps:$4 sm:$0xff]  }
  0x83   : > { %1040 = vmatpush1.bf16.msra.mxu1 %v2564_v9  ;;  %998 = vmatprep.subr.bf16.mxu0 %v2565_v10  ;;  %v2573_v15 = vld [vmem:[%s3256_s6 + $0x284] ss:$16 sps:$4 sm:$0xff]   ;;  %v2576_v17 = vld [vmem:[%s3256_s6 + $0x280] ss:$16 sps:$4 sm:$0xff]   ;;  %v2624_v48 = vld [vmem:[%s3256_s6 + $0x8c] ss:$16 sps:$4 sm:$0xff]  }
  0x84   : > { %1041 = vmatprep.subr.bf16.mxu1 %v2567_v11  ;;  %v2577_v18 = vld [vmem:[%s3256_s6 + $0x64] ss:$16 sps:$4 sm:$0xff]   ;;  %v2581_v20 = vld [vmem:[%s3256_s6 + $0x60] ss:$16 sps:$4 sm:$0xff]   ;;  %v2622_v49 = vld [vmem:[%s3256_s6 + $0x88] ss:$16 sps:$4 sm:$0xff]  }
  0x85   : > { %v2579_v19 = vld [vmem:[%s3256_s6 + $0x264] ss:$16 sps:$4 sm:$0xff]   ;;  %v2582_v21 = vld [vmem:[%s3256_s6 + $0x260] ss:$16 sps:$4 sm:$0xff]   ;;  %v2652_v52 = vld [vmem:[#allocation3 + $0x4] ss:$12 sps:$4 sm:$0xff]  }
  0x86   : > { %999 = vmatpush1.bf16.msra.mxu0 %v2569_v12  ;;  %v2583_v22 = vld [vmem:[%s3256_s6 + $0x44] ss:$16 sps:$4 sm:$0xff]   ;;  %v2587_v24 = vld [vmem:[%s3256_s6 + $0x40] ss:$16 sps:$4 sm:$0xff]   ;;  %v2630_v53 = vld [vmem:[%s3256_s6 + $0x6c] ss:$16 sps:$4 sm:$0xff]   ;;  %1026 = vmatprep.mubr.bf16.mxu0 %v2652_v52 }
  0x87   : > { %1042 = vmatpush1.bf16.msra.mxu1 %v2570_v13  ;;  %1000 = vmatprep.subr.bf16.mxu0 %v2571_v14  ;;  %v2585_v23 = vld [vmem:[%s3256_s6 + $0x244] ss:$16 sps:$4 sm:$0xff]   ;;  %v2588_v25 = vld [vmem:[%s3256_s6 + $0x240] ss:$16 sps:$4 sm:$0xff]   ;;  %v2628_v54 = vld [vmem:[%s3256_s6 + $0x68] ss:$16 sps:$4 sm:$0xff]  }
  0x88   : > { %1043 = vmatprep.subr.bf16.mxu1 %v2573_v15  ;;  %v2589_v26 = vld [vmem:[%s3256_s6 + $0x24] ss:$16 sps:$4 sm:$0xff]   ;;  %v2593_v28 = vld [vmem:[%s3256_s6 + $0x20] ss:$16 sps:$4 sm:$0xff]   ;;  %v2636_v57 = vld [vmem:[%s3256_s6 + $0x4c] ss:$16 sps:$4 sm:$0xff]  }
  0x89   : > { %v2591_v27 = vld [vmem:[%s3256_s6 + $0x224] ss:$16 sps:$4 sm:$0xff]   ;;  %v2594_v29 = vld [vmem:[%s3256_s6 + $0x220] ss:$16 sps:$4 sm:$0xff]   ;;  %v2634_v58 = vld [vmem:[%s3256_s6 + $0x48] ss:$16 sps:$4 sm:$0xff]  }
  0x8a   : > { %1001 = vmatpush1.bf16.msra.mxu0 %v2575_v16  ;;  %v2595_v30 = vld [vmem:[%s3256_s6 + $0x4] ss:$16 sps:$4 sm:$0xff]   ;;  %v2599_v32 = vld [vmem:[%s3256_s6] ss:$16 sps:$4 sm:$0xff]   ;;  %v2642_v61 = vld [vmem:[%s3256_s6 + $0x2c] ss:$16 sps:$4 sm:$0xff]  }
  0x8b   : > { %1044 = vmatpush1.bf16.msra.mxu1 %v2576_v17  ;;  %1002 = vmatprep.subr.bf16.mxu0 %v2577_v18  ;;  %v2597_v31 = vld [vmem:[%s3256_s6 + $0x204] ss:$16 sps:$4 sm:$0xff]   ;;  %v2600_v33 = vld [vmem:[%s3256_s6 + $0x200] ss:$16 sps:$4 sm:$0xff]   ;;  %v2640_v62 = vld [vmem:[%s3256_s6 + $0x28] ss:$16 sps:$4 sm:$0xff]  }
  0x8c   : > { %1045 = vmatprep.subr.bf16.mxu1 %v2579_v19  ;;  %v2601_v34 = vld [vmem:[%s3256_s6 + $0x1e4] ss:$16 sps:$4 sm:$0xff]   ;;  %v3311_v36 = vld [vmem:[#allocation3 + $0x8] ss:$12 sps:$4 sm:$0xff]   ;;  %v2646_v2 = vld [vmem:[%s3256_s6 + $0x8] ss:$16 sps:$4 sm:$0xff]  }
  0x8d   : > { %v2607_v38 = vld [vmem:[%s3256_s6 + $0x1e0] ss:$16 sps:$4 sm:$0xff]   ;;  %v2608_v39 = vld [vmem:[%s3256_s6 + $0x1c4] ss:$16 sps:$4 sm:$0xff]   ;;  %v2648_v1 = vld [vmem:[%s3256_s6 + $0xc] ss:$16 sps:$4 sm:$0xff]  }
  0x8e   : > { %1003 = vmatpush1.bf16.msra.mxu0 %v2581_v20  ;;  %v2613_v42 = vld [vmem:[%s3256_s6 + $0x1c0] ss:$16 sps:$4 sm:$0xff]   ;;  %v2614_v43 = vld [vmem:[%s3256_s6 + $0x1a4] ss:$16 sps:$4 sm:$0xff]   ;;  %v2655_v5 = vld [vmem:[%s3256_s6 + $0x1ec] ss:$16 sps:$4 sm:$0xff]  }
  0x8f   : > { %1046 = vmatpush1.bf16.msra.mxu1 %v2582_v21  ;;  %1004 = vmatprep.subr.bf16.mxu0 %v2583_v22  ;;  %v2619_v46 = vld [vmem:[%s3256_s6 + $0x1a0] ss:$16 sps:$4 sm:$0xff]   ;;  %v2620_v47 = vld [vmem:[%s3256_s6 + $0x184] ss:$16 sps:$4 sm:$0xff]   ;;  %v2658_v6 = vld [vmem:[%s3256_s6 + $0x2ec] ss:$16 sps:$4 sm:$0xff]  }
  0x90   : > { %1047 = vmatprep.subr.bf16.mxu1 %v2585_v23  ;;  %v2625_v50 = vld [vmem:[%s3256_s6 + $0x180] ss:$16 sps:$4 sm:$0xff]   ;;  %v2626_v51 = vld [vmem:[%s3256_s6 + $0x164] ss:$16 sps:$4 sm:$0xff]   ;;  %v2653_v8 = vld [vmem:[%s3256_s6 + $0x1e8] ss:$16 sps:$4 sm:$0xff]  }
  0x91   : > { %v2631_v55 = vld [vmem:[%s3256_s6 + $0x160] ss:$16 sps:$4 sm:$0xff]   ;;  %v2632_v56 = vld [vmem:[%s3256_s6 + $0x144] ss:$16 sps:$4 sm:$0xff]   ;;  %v2656_v9 = vld [vmem:[%s3256_s6 + $0x2e8] ss:$16 sps:$4 sm:$0xff]  }
  0x92   : > { %1005 = vmatpush1.bf16.msra.mxu0 %v2587_v24  ;;  %v2637_v59 = vld [vmem:[%s3256_s6 + $0x140] ss:$16 sps:$4 sm:$0xff]   ;;  %v2638_v60 = vld [vmem:[%s3256_s6 + $0x124] ss:$16 sps:$4 sm:$0xff]   ;;  %v2661_v10 = vld [vmem:[%s3256_s6 + $0x1cc] ss:$16 sps:$4 sm:$0xff]  }
  0x93   : > { %1048 = vmatpush1.bf16.msra.mxu1 %v2588_v25  ;;  %1006 = vmatprep.subr.bf16.mxu0 %v2589_v26  ;;  %v2643_v63 = vld [vmem:[%s3256_s6 + $0x120] ss:$16 sps:$4 sm:$0xff]   ;;  %v2644_v0 = vld [vmem:[%s3256_s6 + $0x104] ss:$16 sps:$4 sm:$0xff]   ;;  %v2664_v11 = vld [vmem:[%s3256_s6 + $0x2cc] ss:$16 sps:$4 sm:$0xff]  }
  0x94   : > { %1049 = vmatprep.subr.bf16.mxu1 %v2591_v27  ;;  %v2649_v4 = vld [vmem:[%s3256_s6 + $0x100] ss:$16 sps:$4 sm:$0xff]   ;;  %v3346_v7 = vld [vmem:[#allocation3] ss:$12 sps:$4 sm:$0xff]   ;;  %v2667_v14 = vld [vmem:[%s3256_s6 + $0x1ac] ss:$16 sps:$4 sm:$0xff]  }
  0x95   : > { %v2659_v12 = vld [vmem:[%s3256_s6 + $0x1c8] ss:$16 sps:$4 sm:$0xff]   ;;  %v2670_v15 = vld [vmem:[%s3256_s6 + $0x2ac] ss:$16 sps:$4 sm:$0xff]  }
  0x96   : > { %1007 = vmatpush1.bf16.msra.mxu0 %v2593_v28  ;;  %v2662_v13 = vld [vmem:[%s3256_s6 + $0x2c8] ss:$16 sps:$4 sm:$0xff]   ;;  %v2673_v18 = vld [vmem:[%s3256_s6 + $0x18c] ss:$16 sps:$4 sm:$0xff]  }
  0x97   : > { %1050 = vmatpush1.bf16.msra.mxu1 %v2594_v29  ;;  %1008 = vmatprep.subr.bf16.mxu0 %v2595_v30  ;;  %v2665_v16 = vld [vmem:[%s3256_s6 + $0x1a8] ss:$16 sps:$4 sm:$0xff]   ;;  %v2676_v19 = vld [vmem:[%s3256_s6 + $0x28c] ss:$16 sps:$4 sm:$0xff]  }
  0x98   : > { %1051 = vmatprep.subr.bf16.mxu1 %v2597_v31  ;;  %v2668_v17 = vld [vmem:[%s3256_s6 + $0x2a8] ss:$16 sps:$4 sm:$0xff]   ;;  %v2679_v22 = vld [vmem:[%s3256_s6 + $0x16c] ss:$16 sps:$4 sm:$0xff]  }
  0x99   : > { %v2671_v20 = vld [vmem:[%s3256_s6 + $0x188] ss:$16 sps:$4 sm:$0xff]   ;;  %v2682_v23 = vld [vmem:[%s3256_s6 + $0x26c] ss:$16 sps:$4 sm:$0xff]  }
  0x9a   : > { %1009 = vmatpush1.bf16.msra.mxu0 %v2599_v32  ;;  %v2674_v21 = vld [vmem:[%s3256_s6 + $0x288] ss:$16 sps:$4 sm:$0xff]   ;;  %v2685_v25 = vld [vmem:[%s3256_s6 + $0x14c] ss:$16 sps:$4 sm:$0xff]  }
  0x9b   : > { %1052 = vmatpush1.bf16.msra.mxu1 %v2600_v33  ;;  %1010 = vmatprep.subr.bf16.mxu0 %v2601_v34  ;;  %v2680_v24 = vld [vmem:[%s3256_s6 + $0x268] ss:$16 sps:$4 sm:$0xff]   ;;  %v2688_v26 = vld [vmem:[%s3256_s6 + $0x24c] ss:$16 sps:$4 sm:$0xff]  }
  0x9c   : > { %1080 = vmatprep.subr.bf16.mxu1 %v2606_v35  ;;  %v2683_v27 = vld [vmem:[%s3256_s6 + $0x148] ss:$16 sps:$4 sm:$0xff]   ;;  %v2691_v29 = vld [vmem:[%s3256_s6 + $0x12c] ss:$16 sps:$4 sm:$0xff]  }
  0x9d   : > { %v2686_v28 = vld [vmem:[%s3256_s6 + $0x248] ss:$16 sps:$4 sm:$0xff]   ;;  %v2694_v30 = vld [vmem:[%s3256_s6 + $0x22c] ss:$16 sps:$4 sm:$0xff]  }
  0x9e   : > { %1070 = vmatmul.mubr.bf16.vlgmr.msra.gmra.mxu1 %v3311_v36  ;;  %1011 = vmatpush2.bf16.msra.mxu0 %v2607_v38  ;;  %v2689_v31 = vld [vmem:[%s3256_s6 + $0x128] ss:$16 sps:$4 sm:$0xff]   ;;  %v2697_v33 = vld [vmem:[%s3256_s6 + $0x10c] ss:$16 sps:$4 sm:$0xff]   ;;  %v2703_v38 = vld [vmem:[%s3265_s1 + $0xac] ss:$12 sps:$4 sm:$0xff]  }
  0x9f   : > { %1081 = vmatpush1.bf16.msra.mxu1 %v2604_v37  ;;  %1012 = vmatprep.subr.bf16.mxu0 %v2608_v39  ;;  %v2692_v32 = vld [vmem:[%s3256_s6 + $0x228] ss:$16 sps:$4 sm:$0xff]   ;;  %v2700_v34 = vld [vmem:[%s3256_s6 + $0x20c] ss:$16 sps:$4 sm:$0xff]  }
  0xa0   : > { %1082 = vmatprep.subr.bf16.mxu1 %v2612_v40  ;;  %1112 = vmatprep.mubr.bf16.mxu1 %v2652_v52  ;;  %v2695_v35 = vld [vmem:[%s3256_s6 + $0x108] ss:$16 sps:$4 sm:$0xff]   ;;  %v2701_v39 = vld [vmem:[%s3265_s1 + $0xa8] ss:$12 sps:$4 sm:$0xff]  }
  0xa1   : > { %v2698_v37 = vld [vmem:[%s3256_s6 + $0x208] ss:$16 sps:$4 sm:$0xff]  }
  0xa2   : > { %1013 = vmatpush2.bf16.msra.mxu0 %v2613_v42  ;;  %v2706_v40 = vld [vmem:[%s3265_s1 + $0x94] ss:$12 sps:$4 sm:$0xff]   ;;  %v2709_v42 = vld [vmem:[%s3265_s1 + $0x7c] ss:$12 sps:$4 sm:$0xff]  }
  0xa3   : > { %1083 = vmatpush1.bf16.msra.mxu1 %v2610_v41  ;;  %1014 = vmatprep.subr.bf16.mxu0 %v2614_v43  ;;  %v2704_v41 = vld [vmem:[%s3265_s1 + $0x90] ss:$12 sps:$4 sm:$0xff]   ;;  %v2707_v43 = vld [vmem:[%s3265_s1 + $0x78] ss:$12 sps:$4 sm:$0xff]   ;;  %v2718_v52 = vld [vmem:[%s3265_s1 + $0x34] ss:$12 sps:$4 sm:$0xff]  }
  0xa4   : > { %1084 = vmatprep.subr.bf16.mxu1 %v2618_v44  ;;  %v2712_v44 = vld [vmem:[%s3265_s1 + $0x64] ss:$12 sps:$4 sm:$0xff]  }
  0xa6   : > { %1015 = vmatpush2.bf16.msra.mxu0 %v2619_v46  ;;  %v2730_v46 = vld [vmem:[%s3265_s1 + $0x22c] ss:$12 sps:$4 sm:$0xff]  }
  0xa7   : > { %1085 = vmatpush1.bf16.msra.mxu1 %v2616_v45  ;;  %1016 = vmatprep.subr.bf16.mxu0 %v2620_v47  ;;  %v2728_v45 = vld [vmem:[%s3265_s1 + $0x228] ss:$12 sps:$4 sm:$0xff]   ;;  %v2710_v47 = vld [vmem:[%s3265_s1 + $0x60] ss:$12 sps:$4 sm:$0xff]  }
  0xa8   : > { %1086 = vmatprep.subr.bf16.mxu1 %v2624_v48  ;;  %v2715_v48 = vld [vmem:[%s3265_s1 + $0x4c] ss:$12 sps:$4 sm:$0xff]  }
  0xaa   : > { %1017 = vmatpush2.bf16.msra.mxu0 %v2625_v50  ;;  %v2742_v50 = vld [vmem:[%s3265_s1 + $0x1fc] ss:$12 sps:$4 sm:$0xff]  }
  0xab   : > { %1087 = vmatpush1.bf16.msra.mxu1 %v2622_v49  ;;  %1018 = vmatprep.subr.bf16.mxu0 %v2626_v51  ;;  %v2734_v49 = vld [vmem:[%s3265_s1 + $0x210] ss:$12 sps:$4 sm:$0xff]   ;;  %v2713_v51 = vld [vmem:[%s3265_s1 + $0x48] ss:$12 sps:$4 sm:$0xff]  }
  0xac   : > { %1088 = vmatprep.subr.bf16.mxu1 %v2630_v53  ;;  %v2740_v53 = vld [vmem:[%s3265_s1 + $0x1f8] ss:$12 sps:$4 sm:$0xff]  }
  0xae   : > { %1019 = vmatpush2.bf16.msra.mxu0 %v2631_v55  ;;  %v2721_v55 = vld [vmem:[%s3265_s1 + $0x1c] ss:$12 sps:$4 sm:$0xff]  }
  0xaf   : > { %1089 = vmatpush1.bf16.msra.mxu1 %v2628_v54  ;;  %1020 = vmatprep.subr.bf16.mxu0 %v2632_v56  ;;  %v2716_v54 = vld [vmem:[%s3265_s1 + $0x30] ss:$12 sps:$4 sm:$0xff]  }
  0xb0   : > { %1090 = vmatprep.subr.bf16.mxu1 %v2636_v57  ;;  %v2748_v56 = vld [vmem:[%s3265_s1 + $0x1e4] ss:$12 sps:$4 sm:$0xff]   ;;  %v2746_v57 = vld [vmem:[%s3265_s1 + $0x1e0] ss:$12 sps:$4 sm:$0xff]  }
  0xb2   : > { %1021 = vmatpush2.bf16.msra.mxu0 %v2637_v59  ;;  %v2719_v59 = vld [vmem:[%s3265_s1 + $0x18] ss:$12 sps:$4 sm:$0xff]  }
  0xb3   : > { %1091 = vmatpush1.bf16.msra.mxu1 %v2634_v58  ;;  %1022 = vmatprep.subr.bf16.mxu0 %v2638_v60  ;;  %v2754_v58 = vld [vmem:[%s3265_s1 + $0x1cc] ss:$12 sps:$4 sm:$0xff]   ;;  %v2724_v60 = vld [vmem:[%s3265_s1 + $0x4] ss:$12 sps:$4 sm:$0xff]  }
  0xb4   : > { %1092 = vmatprep.subr.bf16.mxu1 %v2642_v61  ;;  %v2752_v61 = vld [vmem:[%s3265_s1 + $0x1c8] ss:$12 sps:$4 sm:$0xff]  }
  0xb6   : > { %1023 = vmatpush2.bf16.msra.mxu0 %v2643_v63  ;;  %v2727_v63 = vld [vmem:[%s3265_s1 + $0x16c] ss:$12 sps:$4 sm:$0xff]  }
  0xb7   : > { %1093 = vmatpush1.bf16.msra.mxu1 %v2640_v62  ;;  %1024 = vmatprep.subr.bf16.mxu0 %v2644_v0  ;;  %v2722_v62 = vld [vmem:[%s3265_s1] ss:$12 sps:$4 sm:$0xff]   ;;  %v2725_v0 = vld [vmem:[%s3265_s1 + $0x168] ss:$12 sps:$4 sm:$0xff]  }
  0xb8   : > { %1094 = vmatprep.subr.bf16.mxu1 %v2648_v1  ;;  %v2733_v1 = vld [vmem:[%s3265_s1 + $0x154] ss:$12 sps:$4 sm:$0xff]  }
  0xba   : > { %1025 = vmatpush2.bf16.msra.mxu0 %v2649_v4  ;;  %v2760_v4 = vld [vmem:[%s3265_s1 + $0x1b4] ss:$12 sps:$4 sm:$0xff]  }
  0xbb   : > { %1095 = vmatpush1.bf16.msra.mxu1 %v2646_v2  ;;  %1123 = vmatprep.subr.bf16.mxu0 %v2658_v6  ;;  %v2731_v2 = vld [vmem:[%s3265_s1 + $0x150] ss:$12 sps:$4 sm:$0xff]  }
  0xbc   : > { %1096 = vmatprep.subr.bf16.mxu1 %v2655_v5  ;;  %v2739_v5 = vld [vmem:[%s3265_s1 + $0x13c] ss:$12 sps:$4 sm:$0xff]  }
  0xbd   : > { %1027 = vmatmul.mubr.bf16.vlgmr.msra.gmra.mxu0 %v3346_v7  ;;  %v2758_v6 = vld [vmem:[%s3265_s1 + $0x1b0] ss:$12 sps:$4 sm:$0xff]  }
  0xbe   : > { %1124 = vmatpush1.bf16.msra.mxu0 %v2656_v9  ;;  %1155 = vmatprep.mubr.bf16.mxu0 %v3068_v3  ;;  %v2677_v3 = vld [vmem:[%s3256_s6 + $0x168] ss:$16 sps:$4 sm:$0xff]  }
  0xbf   : > { %1097 = vmatpush2.bf16.msra.mxu1 %v2653_v8  ;;  %1125 = vmatprep.subr.bf16.mxu0 %v2664_v11  ;;  %v2766_v8 = vld [vmem:[%s3265_s1 + $0x19c] ss:$12 sps:$4 sm:$0xff]   ;;  %v2745_v9 = vld [vmem:[%s3265_s1 + $0x124] ss:$12 sps:$4 sm:$0xff]   ;;  %v2743_v11 = vld [vmem:[%s3265_s1 + $0x120] ss:$12 sps:$4 sm:$0xff]  }
  0xc0   : > { %1098 = vmatprep.subr.bf16.mxu1 %v2661_v10  ;;  %v2764_v10 = vld [vmem:[%s3265_s1 + $0x198] ss:$12 sps:$4 sm:$0xff]  }
  0xc2   : > { %1126 = vmatpush1.bf16.msra.mxu0 %v2662_v13  ;;  %v2751_v13 = vld [vmem:[%s3265_s1 + $0x10c] ss:$12 sps:$4 sm:$0xff]  }
  0xc3   : > { %1099 = vmatpush2.bf16.msra.mxu1 %v2659_v12  ;;  %1127 = vmatprep.subr.bf16.mxu0 %v2670_v15  ;;  %v2772_v12 = vld [vmem:[%s3265_s1 + $0x184] ss:$12 sps:$4 sm:$0xff]   ;;  %v2749_v15 = vld [vmem:[%s3265_s1 + $0x108] ss:$12 sps:$4 sm:$0xff]  }
  0xc4   : > { %1100 = vmatprep.subr.bf16.mxu1 %v2667_v14  ;;  %v2770_v14 = vld [vmem:[%s3265_s1 + $0x180] ss:$12 sps:$4 sm:$0xff]  }
  0xc6   : > { %1128 = vmatpush1.bf16.msra.mxu0 %v2668_v17  ;;  %v2757_v17 = vld [vmem:[%s3265_s1 + $0xf4] ss:$12 sps:$4 sm:$0xff]  }
  0xc7   : > { %1101 = vmatpush2.bf16.msra.mxu1 %v2665_v16  ;;  %1129 = vmatprep.subr.bf16.mxu0 %v2676_v19  ;;  %v2775_v16 = vld [vmem:[%s3265_s1 + $0x2ec] ss:$12 sps:$4 sm:$0xff]   ;;  %v2755_v19 = vld [vmem:[%s3265_s1 + $0xf0] ss:$12 sps:$4 sm:$0xff]  }
  0xc8   : > { %1102 = vmatprep.subr.bf16.mxu1 %v2673_v18  ;;  %v2773_v18 = vld [vmem:[%s3265_s1 + $0x2e8] ss:$12 sps:$4 sm:$0xff]  }
  0xca   : > { %1130 = vmatpush1.bf16.msra.mxu0 %v2674_v21  ;;  %v2780_v21 = vld [vmem:[%s3265_s1 + $0x2d4] ss:$12 sps:$4 sm:$0xff]  }
  0xcb   : > { %1103 = vmatpush2.bf16.msra.mxu1 %v2671_v20  ;;  %1131 = vmatprep.subr.bf16.mxu0 %v2682_v23  ;;  %v2778_v20 = vld [vmem:[%s3265_s1 + $0x2d0] ss:$12 sps:$4 sm:$0xff]   ;;  %v2761_v23 = vld [vmem:[%s3265_s1 + $0xd8] ss:$12 sps:$4 sm:$0xff]  }
  0xcc   : > { %1104 = vmatprep.subr.bf16.mxu1 %v2679_v22  ;;  %v2763_v22 = vld [vmem:[%s3265_s1 + $0xdc] ss:$12 sps:$4 sm:$0xff]  }
  0xce   : > { %1132 = vmatpush1.bf16.msra.mxu0 %v2680_v24  ;;  %v2785_v24 = vld [vmem:[%s3265_s1 + $0x2bc] ss:$12 sps:$4 sm:$0xff]  }
  0xcf   : > { %1105 = vmatpush2.bf16.msra.mxu1 %v2677_v3  ;;  %1133 = vmatprep.subr.bf16.mxu0 %v2688_v26  ;;  %v2783_v3 = vld [vmem:[%s3265_s1 + $0x2b8] ss:$12 sps:$4 sm:$0xff]   ;;  %v2767_v26 = vld [vmem:[%s3265_s1 + $0xc0] ss:$12 sps:$4 sm:$0xff]  }
  0xd0   : > { %1106 = vmatprep.subr.bf16.mxu1 %v2685_v25  ;;  %v2769_v25 = vld [vmem:[%s3265_s1 + $0xc4] ss:$12 sps:$4 sm:$0xff]  }
  0xd2   : > { %1134 = vmatpush1.bf16.msra.mxu0 %v2686_v28  ;;  %v2790_v28 = vld [vmem:[%s3265_s1 + $0x2a4] ss:$12 sps:$4 sm:$0xff]  }
  0xd3   : > { %1107 = vmatpush2.bf16.msra.mxu1 %v2683_v27  ;;  %1135 = vmatprep.subr.bf16.mxu0 %v2694_v30  ;;  %v2788_v27 = vld [vmem:[%s3265_s1 + $0x2a0] ss:$12 sps:$4 sm:$0xff]   ;;  %v2793_v30 = vld [vmem:[%s3265_s1 + $0x288] ss:$12 sps:$4 sm:$0xff]  }
  0xd4   : > { %1108 = vmatprep.subr.bf16.mxu1 %v2691_v29  ;;  %v2776_v29 = vld [vmem:[%s3265_s1 + $0x170] ss:$12 sps:$4 sm:$0xff]  }
  0xd6   : > { %1136 = vmatpush1.bf16.msra.mxu0 %v2692_v32  ;;  %v2800_v32 = vld [vmem:[%s3265_s1 + $0x274] ss:$12 sps:$4 sm:$0xff]  }
  0xd7   : > { %1109 = vmatpush2.bf16.msra.mxu1 %v2689_v31  ;;  %1137 = vmatprep.subr.bf16.mxu0 %v2700_v34  ;;  %v2795_v31 = vld [vmem:[%s3265_s1 + $0x28c] ss:$12 sps:$4 sm:$0xff]   ;;  %v2805_v34 = vld [vmem:[%s3265_s1 + $0x25c] ss:$12 sps:$4 sm:$0xff]  }
  0xd8   : > { %1110 = vmatprep.subr.bf16.mxu1 %v2697_v33  ;;  %v2798_v33 = vld [vmem:[%s3265_s1 + $0x270] ss:$12 sps:$4 sm:$0xff]  }
  0xda   : > { %1138 = vmatpush1.bf16.msra.mxu0 %v2698_v37  ;;  %v2810_v37 = vld [vmem:[%s3265_s1 + $0x244] ss:$12 sps:$4 sm:$0xff]  }
  0xdb   : > { %1111 = vmatpush2.bf16.msra.mxu1 %v2695_v35  ;;  %1824 = vmatprep.subr.bf16.mxu0 %v2703_v38  ;;  %v2803_v35 = vld [vmem:[%s3265_s1 + $0x258] ss:$12 sps:$4 sm:$0xff]   ;;  %v2808_v38 = vld [vmem:[%s3265_s1 + $0x240] ss:$12 sps:$4 sm:$0xff]  }
  0xdc   : > { %1867 = vmatprep.subr.bf16.mxu1 %v2730_v46 }
  0xdd   : > { %1156 = vmatmul.mubr.bf16.vlgmr.msra.gmra.mxu0 %v3311_v36  ;;  %v2736_v36 = vld [vmem:[%s3265_s1 + $0x214] ss:$12 sps:$4 sm:$0xff]  }
  0xde   : > { %1113 = vmatmul.mubr.bf16.vlgmr.msra.gmra.mxu1 %v3346_v7  ;;  %1825 = vmatpush1.bf16.msra.mxu0 %v2701_v39  ;;  %v2737_v7 = vld [vmem:[%s3265_s1 + $0x138] ss:$12 sps:$4 sm:$0xff]   ;;  %v2813_v39 = vld [vmem:[%s3265_s1 + $0x2f0] ss:$12 sps:$4 sm:$0xff]  }
  0xdf   : > { %1826 = vmatprep.subr.bf16.mxu0 %v2706_v40  ;;  %1868 = vmatpush1.bf16.msra.mxu1 %v2728_v45  ;;  %v478_v40 = vlaneseq  ;;  %v476_v45 = vld [vmem:[%s315_s11] sm:$0xf] }
  0xe0   : > { %1869 = vmatprep.subr.bf16.mxu1 %v2736_v36 }
  0xe2   : > { %1827 = vmatpush1.bf16.msra.mxu0 %v2704_v41  ;;  %v3448_v41 = vshrl.u32 %v478_v40, 7 }
  0xe3   : > { %1828 = vmatprep.subr.bf16.mxu0 %v2709_v42  ;;  %1870 = vmatpush1.bf16.msra.mxu1 %v2734_v49 }
  0xe4   : > { %1871 = vmatprep.subr.bf16.mxu1 %v2742_v50  ;;  %v484_v42 = vsub.s32 1, %v3448_v41 }
  0xe6   : > { %1829 = vmatpush1.bf16.msra.mxu0 %v2707_v43  ;;  %v485_v46 = vrot.slane %v476_v45, %v484_v42 }
  0xe7   : > { %1830 = vmatprep.subr.bf16.mxu0 %v2712_v44  ;;  %1872 = vmatpush1.bf16.msra.mxu1 %v2740_v53  ;;  %v480_v44 = vsub.s32 0, %v3448_v41 }
  0xe8   : > { %1873 = vmatprep.subr.bf16.mxu1 %v2748_v56 }
  0xe9   : > { %v481_v36 = vrot.slane %v476_v45, %v480_v44 }
  0xea   : > { %1831 = vmatpush1.bf16.msra.mxu0 %v2710_v47 }
  0xeb   : > { %1832 = vmatprep.subr.bf16.mxu0 %v2715_v48  ;;  %1874 = vmatpush1.bf16.msra.mxu1 %v2746_v57 }
  0xec   : > { %1875 = vmatprep.subr.bf16.mxu1 %v2754_v58 }
  0xee   : > { %1833 = vmatpush1.bf16.msra.mxu0 %v2713_v51 }
  0xef   : > { %1834 = vmatprep.subr.bf16.mxu0 %v2718_v52  ;;  %1876 = vmatpush1.bf16.msra.mxu1 %v2752_v61 }
  0xf0   : > { %1877 = vmatprep.subr.bf16.mxu1 %v2760_v4  ;;  %v2777_v4 = vld [vmem:[%s3265_s1 + $0xb0] ss:$12 sps:$4 sm:$0xff]  }
  0xf2   : > { %1835 = vmatpush1.bf16.msra.mxu0 %v2716_v54 }
  0xf3   : > { %1836 = vmatprep.subr.bf16.mxu0 %v2721_v55  ;;  %1878 = vmatpush1.bf16.msra.mxu1 %v2758_v6  ;;  %v2781_v6 = vld [vmem:[%s3265_s1 + $0x158] ss:$12 sps:$4 sm:$0xff]  }
  0xf4   : > { %1879 = vmatprep.subr.bf16.mxu1 %v2766_v8  ;;  %v2786_v8 = vld [vmem:[%s3265_s1 + $0x140] ss:$12 sps:$4 sm:$0xff]  }
  0xf6   : > { %1837 = vmatpush1.bf16.msra.mxu0 %v2719_v59 }
  0xf7   : > { %1838 = vmatprep.subr.bf16.mxu0 %v2724_v60  ;;  %1880 = vmatpush1.bf16.msra.mxu1 %v2764_v10  ;;  %v2791_v10 = vld [vmem:[%s3265_s1 + $0x128] ss:$12 sps:$4 sm:$0xff]  }
  0xf8   : > { %1881 = vmatprep.subr.bf16.mxu1 %v2772_v12  ;;  %v2796_v12 = vld [vmem:[%s3265_s1 + $0x110] ss:$12 sps:$4 sm:$0xff]  }
  0xfa   : > { %1839 = vmatpush1.bf16.msra.mxu0 %v2722_v62 }
  0xfb   : > { %1840 = vmatprep.subr.bf16.mxu0 %v2727_v63  ;;  %1882 = vmatpush1.bf16.msra.mxu1 %v2770_v14  ;;  %v488_v14 = vsub.s32 2, %v3448_v41 }
  0xfc   : > { %1883 = vmatprep.subr.bf16.mxu1 %v2775_v16  ;;  %v2801_v16 = vld [vmem:[%s3265_s1 + $0xf8] ss:$12 sps:$4 sm:$0xff]  }
  0xfe   : > { %1841 = vmatpush2.bf16.msra.mxu0 %v2725_v0 }
  0xff   : > { %1842 = vmatprep.subr.bf16.mxu0 %v2733_v1  ;;  %1884 = vmatpush2.bf16.msra.mxu1 %v2773_v18  ;;  %v489_v18 = vrot.slane %v476_v45, %v488_v14 }
 0x100   : > { %1885 = vmatprep.subr.bf16.mxu1 %v2780_v21  ;;  %v2802_v21 = vld [vmem:[%s3265_s1 + $0x38] ss:$12 sps:$4 sm:$0xff]  }
 0x102   : > { %1843 = vmatpush2.bf16.msra.mxu0 %v2731_v2 }
 0x103   : > { %1844 = vmatprep.subr.bf16.mxu0 %v2739_v5  ;;  %1886 = vmatpush2.bf16.msra.mxu1 %v2778_v20 }
 0x104   : > { %1887 = vmatprep.subr.bf16.mxu1 %v2785_v24 }
 0x106   : > { %1845 = vmatpush2.bf16.msra.mxu0 %v2737_v7  ;;  %v2782_v7 = vld [vmem:[%s3265_s1 + $0x98] ss:$12 sps:$4 sm:$0xff]  }
 0x107   : > { %1846 = vmatprep.subr.bf16.mxu0 %v2745_v9  ;;  %1888 = vmatpush2.bf16.msra.mxu1 %v2783_v3  ;;  %v2787_v9 = vld [vmem:[%s3265_s1 + $0x80] ss:$12 sps:$4 sm:$0xff]  }
 0x108   : > { %1889 = vmatprep.subr.bf16.mxu1 %v2790_v28  ;;  %v2806_v3 = vld [vmem:[%s3265_s1 + $0xe0] ss:$12 sps:$4 sm:$0xff]  }
 0x10a   : > { %1847 = vmatpush2.bf16.msra.mxu0 %v2743_v11  ;;  %v2792_v11 = vld [vmem:[%s3265_s1 + $0x68] ss:$12 sps:$4 sm:$0xff]  }
 0x10b   : > { %1848 = vmatprep.subr.bf16.mxu0 %v2751_v13  ;;  %1890 = vmatpush2.bf16.msra.mxu1 %v2788_v27  ;;  %v492_v13 = vsub.s32 3, %v3448_v41 }
 0x10c   : > { %1891 = vmatprep.subr.bf16.mxu1 %v2795_v31  ;;  %v2811_v31 = vld [vmem:[%s3265_s1 + $0xc8] ss:$12 sps:$4 sm:$0xff]  }
 0x10e   : > { %1849 = vmatpush2.bf16.msra.mxu0 %v2749_v15  ;;  %v2797_v15 = vld [vmem:[%s3265_s1 + $0x50] ss:$12 sps:$4 sm:$0xff]  }
 0x10f   : > { %1850 = vmatprep.subr.bf16.mxu0 %v2757_v17  ;;  %1892 = vmatpush2.bf16.msra.mxu1 %v2793_v30  ;;  %v493_v17 = vrot.slane %v476_v45, %v492_v13 }
 0x110   : > { %1893 = vmatprep.subr.bf16.mxu1 %v2800_v32 }
 0x112   : > { %1851 = vmatpush2.bf16.msra.mxu0 %v2755_v19 }
 0x113   : > { %1852 = vmatprep.subr.bf16.mxu0 %v2763_v22  ;;  %1894 = vmatpush2.bf16.msra.mxu1 %v2798_v33 }
 0x114   : > { %1895 = vmatprep.subr.bf16.mxu1 %v2805_v34 }
 0x116   : > { %1853 = vmatpush2.bf16.msra.mxu0 %v2761_v23 }
 0x117   : > { %1854 = vmatprep.subr.bf16.mxu0 %v2769_v25  ;;  %1896 = vmatpush2.bf16.msra.mxu1 %v2803_v35 }
 0x118   : > { %1897 = vmatprep.subr.bf16.mxu1 %v2810_v37 }
 0x11a   : > { %1855 = vmatpush2.bf16.msra.mxu0 %v2767_v26 }
 0x11b   : > { %2403 = vmatprep.subr.bf16.mxu0 %v2776_v29  ;;  %1898 = vmatpush2.bf16.msra.mxu1 %v2808_v38  ;;  %v2807_v29 = vld [vmem:[%s3265_s1 + $0x20] ss:$12 sps:$4 sm:$0xff]  }
 0x11c   : > { %2425 = vmatprep.subr.bf16.mxu1 %v2813_v39  ;;  %v2812_v39 = vld [vmem:[%s3265_s1 + $0x8] ss:$12 sps:$4 sm:$0xff]  }
 0x15e   : > { %v1071_v43 = vpop.f32.mrf.mxu1 }
 0x160   : > { %v1073_v47 = vpop.f32.mrf.mxu1 }
 0x162   : > { %v1075_v51 = vpop.f32.mrf.mxu1 }
 0x164   : > { %v1077_v59 = vpop.f32.mrf.mxu1 }
 0x17d   : > { %v1028_v48 = vpop.f32.mrf.mxu0 }
 0x17e   : > { %v1029_v52 = vadd.f32 %v1028_v48, %v481_v36 }
 0x17f   : > { %v1030_v49 = vpop.f32.mrf.mxu0 }
 0x180   : > { %v1031_v50 = vadd.f32 %v1030_v49, %v485_v46  ;;  %v1072_v60 = vadd.f32 %v1071_v43, %v1029_v52  ;;  %v2815_v49 = vld [vmem:[%s3265_s1 + $0x2d8] ss:$12 sps:$4 sm:$0xff]   ;;  %v2818_v52 = vld [vmem:[%s3265_s1 + $0x200] ss:$12 sps:$4 sm:$0xff]  }
 0x181   : > { %v1032_v53 = vpop.f32.mrf.mxu0 }
 0x182   : > { %v1033_v54 = vadd.f32 %v1032_v53, %v481_v36  ;;  %v1074_v56 = vadd.f32 %v1073_v47, %v1031_v50  ;;  %v1166_v1 = vmax.f32 %v1072_v60, 0.0  ;;  %v2814_v36 = vld [vmem:[%s3265_s1 + $0x230] ss:$12 sps:$4 sm:$0xff]   ;;  %v2816_v50 = vld [vmem:[%s3265_s1 + $0x218] ss:$12 sps:$4 sm:$0xff]  }
 0x183   : > { %v1034_v55 = vpop.f32.mrf.mxu0  ;;  %v2819_v53 = vld [vmem:[%s3265_s1 + $0x2a8] ss:$12 sps:$4 sm:$0xff]   ;;  %v2826_v60 = vld [vmem:[%s3265_s1 + $0x1a0] ss:$12 sps:$4 sm:$0xff]  }
 0x184   : > { %v1076_v57 = vadd.f32 %v1075_v51, %v1033_v54  ;;  %v1035_v58 = vadd.f32 %v1034_v55, %v485_v46  ;;  %v1167_v63 = vmax.f32 %v1074_v56, 0.0  ;;  %v2817_v51 = vld [vmem:[%s3265_s1 + $0x2c0] ss:$12 sps:$4 sm:$0xff]   ;;  %v2820_v54 = vld [vmem:[%s3265_s1 + $0x1e8] ss:$12 sps:$4 sm:$0xff]  }
 0x185   : > { %v2821_v55 = vld [vmem:[%s3265_s1 + $0x290] ss:$12 sps:$4 sm:$0xff]  }
 0x186   : > { %v1078_v61 = vadd.f32 %v1077_v59, %v1035_v58  ;;  %v1170_v62 = vmax.f32 %v1076_v57, 0.0  ;;  %v2822_v56 = vld [vmem:[%s3265_s1 + $0x1d0] ss:$12 sps:$4 sm:$0xff]   ;;  %v2823_v57 = vld [vmem:[%s3265_s1 + $0x278] ss:$12 sps:$4 sm:$0xff]  }
 0x187   : > { %v2824_v58 = vld [vmem:[%s3265_s1 + $0x1b8] ss:$12 sps:$4 sm:$0xff]   ;;  %v2825_v59 = vld [vmem:[%s3265_s1 + $0x260] ss:$12 sps:$4 sm:$0xff]  }
 0x188   : > { %v1171_v0 = vmax.f32 %v1078_v61, 0.0  ;;  %v1180_v5 = vpack.c.bf16 %v1170_v62, %v1166_v1  ;;  %v2827_v61 = vld [vmem:[%s3265_s1 + $0x248] ss:$12 sps:$4 sm:$0xff]   ;;  %v1174_v1 = vld [vmem:[#allocation2 + $0x28] sm:$0xff] }
 0x189   : > { %v2828_v62 = vld [vmem:[%s3265_s1 + $0x188] ss:$12 sps:$4 sm:$0xff]  }
 0x18a   : > { %v1181_v2 = vpack.c.bf16 %v1171_v0, %v1167_v63 }
 0x18c   : > { %1856 = vmatprep.mubr.bf16.mxu0 %v1181_v2 }
 0x18d   : > { %1857 = vmatmul.mubr.bf16.vlgmr.msra.gmra.mxu0 %v1180_v5 }
 0x18e   : > { %2404 = vmatpush3.bf16.msra.mxu0 %v2777_v4  ;;  %1942 = vmatprep.mubr.bf16.mxu0 %v1181_v2 }
 0x18f   : > { %2405 = vmatprep.subr.bf16.mxu0 %v2781_v6  ;;  %v1175_v6 = vld [vmem:[#allocation2 + $0x10] sm:$0xff] }
 0x192   : > { %2406 = vmatpush3.bf16.msra.mxu0 %v2782_v7 }
 0x193   : > { %2407 = vmatprep.subr.bf16.mxu0 %v2786_v8 }
 0x196   : > { %2408 = vmatpush3.bf16.msra.mxu0 %v2787_v9 }
 0x197   : > { %2409 = vmatprep.subr.bf16.mxu0 %v2791_v10  ;;  %v1177_v10 = vld [vmem:[#allocation2] sm:$0xff] }
 0x19a   : > { %2410 = vmatpush3.bf16.msra.mxu0 %v2792_v11 }
 0x19b   : > { %2411 = vmatprep.subr.bf16.mxu0 %v2796_v12 }
 0x19d   : > { %v1157_v20 = vpop.f32.mrf.mxu0 }
 0x19e   : > { %v1114_v19 = vpop.f32.mrf.mxu1  ;;  %2412 = vmatpush3.bf16.msra.mxu0 %v2797_v15 }
 0x19f   : > { %v1159_v23 = vpop.f32.mrf.mxu0  ;;  %2413 = vmatprep.subr.bf16.mxu0 %v2801_v16  ;;  %v1115_v25 = vadd.f32 %v1114_v19, %v489_v18  ;;  %v1178_v16 = vld [vmem:[#allocation2 + $0x18] sm:$0xff] }
 0x1a0   : > { %v1116_v22 = vpop.f32.mrf.mxu1 }
 0x1a1   : > { %v1117_v24 = vadd.f32 %v1116_v22, %v493_v17  ;;  %v1161_v27 = vpop.f32.mrf.mxu0  ;;  %v1158_v35 = vadd.f32 %v1157_v20, %v1115_v25 }
 0x1a2   : > { %v1118_v26 = vpop.f32.mrf.mxu1  ;;  %2414 = vmatpush3.bf16.msra.mxu0 %v2802_v21 }
 0x1a3   : > { %v1119_v28 = vadd.f32 %v1118_v26, %v489_v18  ;;  %2415 = vmatprep.subr.bf16.mxu0 %v2806_v3  ;;  %v1160_v32 = vadd.f32 %v1159_v23, %v1117_v24  ;;  %v1163_v37 = vpop.f32.mrf.mxu0  ;;  %v1168_v46 = vmax.f32 %v1158_v35, 0.0  ;;  %v1179_v35 = vld [vmem:[#allocation2 + $0x20] sm:$0xff] }
 0x1a4   : > { %v1120_v30 = vpop.f32.mrf.mxu1 }
 0x1a5   : > { %v1162_v33 = vadd.f32 %v1161_v27, %v1119_v28  ;;  %v1121_v34 = vadd.f32 %v1120_v30, %v493_v17  ;;  %v1169_v43 = vmax.f32 %v1160_v32, 0.0  ;;  %v1176_v28 = vld [vmem:[#allocation2 + $0x8] sm:$0xff] }
 0x1a6   : > { %2416 = vmatpush3.bf16.msra.mxu0 %v2807_v29 }
 0x1a7   : > { %v1164_v38 = vadd.f32 %v1163_v37, %v1121_v34  ;;  %v1172_v40 = vmax.f32 %v1162_v33, 0.0  ;;  %2417 = vmatprep.subr.bf16.mxu0 %v2811_v31 }
 0x1a9   : > { %v1173_v45 = vmax.f32 %v1164_v38, 0.0  ;;  %v1182_v48 = vpack.c.bf16 %v1172_v40, %v1168_v46 }
 0x1aa   : > { %2418 = vmatpush3.bf16.msra.mxu0 %v2812_v39 }
 0x1ab   : > { %v1183_v47 = vpack.c.bf16 %v1173_v45, %v1169_v43 }
 0x1ad   : > { %1899 = vmatprep.mubr.bf16.mxu1 %v1183_v47  ;;  %1943 = vmatmul.mubr.bf16.vlgmr.msra.gmra.mxu0 %v1180_v5 }
 0x1ae   : > { %1900 = vmatmul.mubr.bf16.vlgmr.msra.gmra.mxu1 %v1182_v48 }
 0x1af   : > { %2426 = vmatpush3.bf16.msra.mxu1 %v2814_v36  ;;  %1983 = vmatprep.mubr.bf16.mxu1 %v1183_v47 }
 0x1b0   : > { %2427 = vmatprep.subr.bf16.mxu1 %v2815_v49 }
 0x1b3   : > { %2428 = vmatpush3.bf16.msra.mxu1 %v2816_v50 }
 0x1b4   : > { %2429 = vmatprep.subr.bf16.mxu1 %v2817_v51 }
 0x1b7   : > { %2430 = vmatpush3.bf16.msra.mxu1 %v2818_v52 }
 0x1b8   : > { %2431 = vmatprep.subr.bf16.mxu1 %v2819_v53 }
 0x1bb   : > { %2432 = vmatpush3.bf16.msra.mxu1 %v2820_v54 }
 0x1bc   : > { %2433 = vmatprep.subr.bf16.mxu1 %v2821_v55 }
 0x1bf   : > { %2434 = vmatpush3.bf16.msra.mxu1 %v2822_v56 }
 0x1c0   : > { %2435 = vmatprep.subr.bf16.mxu1 %v2823_v57 }
 0x1c3   : > { %2436 = vmatpush3.bf16.msra.mxu1 %v2824_v58 }
 0x1c4   : > { %2437 = vmatprep.subr.bf16.mxu1 %v2825_v59 }
 0x1c7   : > { %2438 = vmatpush3.bf16.msra.mxu1 %v2826_v60 }
 0x1c8   : > { %2439 = vmatprep.subr.bf16.mxu1 %v2827_v61 }
 0x1cb   : > { %2440 = vmatpush3.bf16.msra.mxu1 %v2828_v62 }
 0x1ce   : > { %1984 = vmatmul.mubr.bf16.vlgmr.msra.gmra.mxu1 %v1182_v48 }
 0x24d   : > { %v1858_v63 = vpop.f32.mrf.mxu0 }
 0x24f   : > { %v1860_v0 = vpop.f32.mrf.mxu0 }
 0x251   : > { %v1862_v5 = vpop.f32.mrf.mxu0 }
 0x253   : > { %v1864_v15 = vpop.f32.mrf.mxu0 }
 0x26d   : > { %v2419_v21 = vpop.f32.mrf.mxu0 }
 0x26e   : > { %v1901_v2 = vpop.f32.mrf.mxu1 }
 0x26f   : > { %v1902_v4 = vadd.f32 %v1901_v2, %v1858_v63  ;;  %v2420_v22 = vpop.f32.mrf.mxu0 }
 0x270   : > { %v1903_v7 = vpop.f32.mrf.mxu1  ;;  %v2421_v25 = vadd.f32 %v2420_v22, %v2419_v21 }
 0x271   : > { %v1992_v8 = vadd.f32 %v1902_v4, %v1174_v1  ;;  %v1904_v9 = vadd.f32 %v1903_v7, %v1860_v0  ;;  %v2422_v23 = vpop.f32.mrf.mxu0 }
 0x272   : > { %v1905_v11 = vpop.f32.mrf.mxu1 }
 0x273   : > { %1998 = vst [vmem:[#allocation2 + $0x28] sm:$0xff] %v1992_v8  ;;  %v1993_v12 = vadd.f32 %v1904_v9, %v1175_v6  ;;  %v1906_v13 = vadd.f32 %v1905_v11, %v1862_v5  ;;  %v2423_v27 = vpop.f32.mrf.mxu0 }
 0x274   : > { %v1907_v17 = vpop.f32.mrf.mxu1  ;;  %v2424_v32 = vadd.f32 %v2423_v27, %v2422_v23 }
 0x275   : > { %1999 = vst [vmem:[#allocation2 + $0x10] sm:$0xff] %v1993_v12  ;;  %v1995_v18 = vadd.f32 %v1906_v13, %v1177_v10  ;;  %v1908_v19 = vadd.f32 %v1907_v17, %v1864_v15 }
 0x277   : > { %2001 = vst [vmem:[#allocation2] sm:$0xff] %v1995_v18  ;;  %v1996_v20 = vadd.f32 %v1908_v19, %v1178_v16 }
 0x279   : > { %2002 = vst [vmem:[#allocation2 + $0x18] sm:$0xff] %v1996_v20 }
 0x28e   : > { %v2441_v3 = vpop.f32.mrf.mxu1 }
 0x290   : > { %v2442_v24 = vpop.f32.mrf.mxu1 }
 0x291   : > { %v2443_v26 = vadd.f32 %v2442_v24, %v2441_v3 }
 0x292   : > { %v2444_v29 = vpop.f32.mrf.mxu1 }
 0x293   : > { %v1986_v30 = vadd.f32 %v2443_v26, %v2421_v25 }
 0x294   : > { %v2445_v31 = vpop.f32.mrf.mxu1 }
 0x295   : > { %v1994_v33 = vadd.f32 %v1986_v30, %v1176_v28  ;;  %v2446_v34 = vadd.f32 %v2445_v31, %v2444_v29 }
 0x297   : > { %2000 = vst [vmem:[#allocation2 + $0x8] sm:$0xff] %v1994_v33  ;;  %v1989_v37 = vadd.f32 %v2446_v34, %v2424_v32  ;;  %2007 = sbr.rel (%p2396_p6) target bundleno = 678 (0x2a6), region = 68 }
 0x299   : > { %v1997_v38 = vadd.f32 %v1989_v37, %v1179_v35 }
 0x29b   : > { %2003 = vst [vmem:[#allocation2 + $0x20] sm:$0xff] %v1997_v38 }
 0x29c   : > { %v2008_v39 = vld [vmem:[#allocation2 + $0x28] sm:$0xff]  ;;  %v2014_v40 = vld [vmem:[#allocation11] sm:$0x7]  ;;  %v2011_v48 = vld [vmem:[#allocation2] sm:$0xff] }
 0x29d   : > { %v2009_v43 = vld [vmem:[#allocation2 + $0x10] sm:$0xff]  ;;  %v2019_v45 = vrot.slane %v2014_v40, %v480_v44  ;;  %v2023_v46 = vrot.slane %v2014_v40, %v484_v42  ;;  %v2027_v36 = vrot.slane %v2014_v40, %v488_v14  ;;  %v2012_v49 = vld [vmem:[#allocation2 + $0x18] sm:$0xff] }
 0x29e   : > { %v2010_v47 = vld [vmem:[#allocation2 + $0x8] sm:$0xff] }
 0x29f   : > { %v2031_v51 = vadd.f32 %v2019_v45, %v2008_v39  ;;  %v2032_v52 = vadd.f32 %v2023_v46, %v2009_v43  ;;  %v2033_v53 = vadd.f32 %v2027_v36, %v2010_v47  ;;  %v2034_v54 = vadd.f32 %v2019_v45, %v2011_v48 }
 0x2a0   : > { %v2035_v55 = vadd.f32 %v2023_v46, %v2012_v49 }
 0x2a1   : > { %2037 = vst [vmem:[#allocation12] sm:$0xff] %v2031_v51  ;;  %2038 = vst [vmem:[#allocation12 + $0x8] sm:$0xff] %v2032_v52 }
 0x2a2   : > { %v2013_v50 = vld [vmem:[#allocation2 + $0x20] sm:$0xff]  ;;  %2039 = vst [vmem:[#allocation12 + $0x10] sm:$0xff] %v2033_v53  ;;  %2040 = vst [vmem:[#allocation12 + $0x18] sm:$0xff] %v2034_v54 }
 0x2a3   : > { %v2036_v56 = vadd.f32 %v2027_v36, %v2013_v50  ;;  %2041 = vst [vmem:[#allocation12 + $0x20] sm:$0xff] %v2035_v55 }
 0x2a5   : > { %2042 = vst [vmem:[#allocation12 + $0x28] sm:$0xff] %v2036_v56 }
 0x2a6 PF: > { %p2491_p2 = scmp.eq.s32.totalorder %s3131_s24, 2  ;;  %s3069_s21 = smov [#allocation12]  }
 0x2a7   : > { %s2053_s26 = sshll.u32 %s3069_s21, 4  ;;  %s2054_s26 = int_to_ptr.vmem [resolvable:$true] %s2053_s26 }
 0x2a8   : > { %s2965_s13 = scalar_lea.vmem %s2054_s26, 768  ;;  %p2972_p13 = scmp.lt.s32.totalorder %s2054_s26, %s2054_s26 }
 0x2a9   : > { %p2966_p5 = scmp.ne.s32.totalorder %s2054_s26, %s2965_s13  ;;  %p2973_p4 = scmp.lt.s32.totalorder %s2965_s13, %s2965_s13 }
 0x2ab   : > { %p2967_p7 = pnand %p2966_p5, %p2491_p2  ;;  %p2974_p3 = por %p2973_p4, %p2972_p13 }
 0x2ad   : > { %p2968_p9 = pneg %p2967_p7 }
 0x2af   : > { %p2975_p0 = pnand %p2974_p3, %p2968_p9 }
 0x2b1   : > { %2978 = shalt.err (!%p2975_p0)
}
 0x2b2   : > { %s3070_s30 = smov 384   ;;  %s3071_s29 = smov 24  }
 0x2b3   : > { %2466 = dma.vmem_to_hbm [thread:$0]  (%p2491_p2), %s2054_s26, 768, %s3534_s5, [#allocation5], %s3070_s30, %s3070_s30, %s3071_s29  }
 0x2b4   : > { %3030 = dma.done.wait (%p2491_p2), [#allocation5], 768  }
 0x2b5   : > { %3032 = vsyncadd (%p2491_p2), [#allocation5], 4294966528 }
 0x2b6 PF: > { %s23_s23 = sadd.s32 1, %s3055_s23   ;;  %s3555_s4 = sld [smem:[#allocation19_spill]] }
 0x2b7   : > { %p20_p10 = scmp.ge.s32.totalorder %s23_s23, 5   ;;  %s3556_s12 = sld [smem:[#allocation18_spill]] }
 0x2b8   : > { %s3557_s18 = smov %s3039_s19  ;;  %s3558_s19 = smov %s3043_s20 }
 0x2b9   : > { %s3560_s21 = smov %s3051_s22  ;;  %22 = sbr.rel (!%p20_p10) target bundleno = 11 (0xb), region = 120 }
 0x2bc   : > { %s3559_s20 = smov %s3555_s4 }
 0x2bd   : > { %s3561_s22 = smov %s3556_s12 }
 0x2be   :  { %2069 = vsyncpa [#allocation4], 1 }
 0x2bf   :  { %2071 = vsyncpa [#allocation4 + $0x1], 1 }
 0x2c0   :  { %2072 = vsyncpa [#allocation7], 1 }
 0x2c1   :  { %2074 = vsyncpa [#allocation7 + $0x1], 1 }
 0x2c2   :  { %2075 = vsyncpa [#allocation10], 1 }
 0x2c3   :  { %2077 = vsyncpa [#allocation10 + $0x1], 1 }
 0x2c4   :  { %2078 = vsyncpa [#allocation5], 1 }
 0x2c5   :  { %2080 = vsyncpa [#allocation5 + $0x1], 1 }

</bundles_post_ra>
